<compile_context>
chip_gen: v7x
topology: tpu7x:2x2x1
jax: 0.10.0
libtpu: 0.0.40
codegen_flags: <defaults>
</compile_context>

<pallas_src>
import jax
import jax.numpy as jnp
from jax import lax
from jax.experimental import pallas as pl
from jax.experimental.pallas import tpu as pltpu

# ----------------------------- model config ---------------------------------
HIDDEN_SIZE = 64
NUM_HEADS = 4
NUM_KV_HEADS = 2
HEAD_DIM = HIDDEN_SIZE // NUM_HEADS          # 16
Q_SIZE = NUM_HEADS * HEAD_DIM                # 64
KV_SIZE = NUM_KV_HEADS * HEAD_DIM            # 32
QKV_OUT = Q_SIZE + 2 * KV_SIZE               # 128 == exactly one lane tile
LANE = 128
AUG_OUT = 2 * LANE                           # 256 = [q|k|v | rot(q)|rot(k)|pad]
H_PAD = 128                                  # lane-dense padded output width
SCALING = HEAD_DIM ** -0.5
ROPE_THETA = 1_000_000.0
MAX_POSITIONS = 8192
SEQ_LEN = 8
GROUP = NUM_HEADS // NUM_KV_HEADS            # 2
NEG_INF = -1e30


# ------------------------------ Pallas kernel --------------------------------
def _telechat2_attn_kernel(x_ref, wqkv_ref, tcos_ref, tsin_ref,
                           wdense_ref, bias_ref, o_ref):
    S = x_ref.shape[0]
    hd = HEAD_DIM

    # QKV projection: one bf16 MXU matmul (f32 accumulation) producing
    # z = [q | k | v | rotate_half(q) | rotate_half(k) | 0-pad], 2x128 lanes,
    # so both halves are lane-tile aligned slices.
    x = x_ref[...].astype(jnp.bfloat16)
    z = jnp.dot(x, wqkv_ref[...], preferred_element_type=jnp.float32)    # [S, 256]
    z_lo = z[:, :LANE]            # [S, 128] = [q | k | v]
    z_hi = z[:, LANE:]            # [S, 128] = [rot(q) | rot(k) | zeros]

    # RoPE (+ softmax scaling folded into the q columns of the tables):
    # two full-slab f32 VPU multiplies + one add.  The "v" lanes of tcos are 1
    # and the corresponding lanes of z_hi are 0, so v passes through untouched.
    qkv = z_lo * tcos_ref[...] + z_hi * tsin_ref[...]                    # [S, 128]
    q = qkv[:, :Q_SIZE]
    k = qkv[:, Q_SIZE:Q_SIZE + KV_SIZE]
    v = qkv[:, Q_SIZE + KV_SIZE:]

    # Scores: one bf16 matmul per kv head with that kv head's query group
    # stacked along sublanes -> [GROUP*S, S]; concatenated -> [NH*S, S] (f32).
    score_blocks = []
    for kvh in range(NUM_KV_HEADS):
        kh = k[:, kvh * hd:(kvh + 1) * hd].astype(jnp.bfloat16)          # [S, hd]
        h0 = kvh * GROUP
        q_grp = jnp.concatenate(
            [q[:, (h0 + g) * hd:(h0 + g + 1) * hd] for g in range(GROUP)],
            axis=0).astype(jnp.bfloat16)                                  # [GROUP*S, hd]
        score_blocks.append(
            lax.dot_general(q_grp, kh, (((1,), (1,)), ((), ())),
                            preferred_element_type=jnp.float32))          # q @ k^T
    scores = jnp.concatenate(score_blocks, axis=0)                        # [NH*S, S]

    # Causal mask generated in-kernel (no quadratic HBM mask input).
    row = lax.broadcasted_iota(jnp.int32, scores.shape, 0) % S
    col = lax.broadcasted_iota(jnp.int32, scores.shape, 1)
    scores = jnp.where(col <= row, scores, NEG_INF)

    # Single f32 softmax over all heads (rows are independent).
    m = jnp.max(scores, axis=-1, keepdims=True)
    e = jnp.exp(scores - m)
    p = e * pl.reciprocal(jnp.sum(e, axis=-1, keepdims=True), approx=True)

    # P @ V per kv head, then per-head partial dense products accumulated
    # directly (no 16-lane-wide concatenation of head outputs).
    acc = None
    for kvh in range(NUM_KV_HEADS):
        vh = v[:, kvh * hd:(kvh + 1) * hd].astype(jnp.bfloat16)           # [S, hd]
        pg = p[kvh * GROUP * S:(kvh + 1) * GROUP * S].astype(jnp.bfloat16)
        og = jnp.dot(pg, vh, preferred_element_type=jnp.float32)          # [GROUP*S, hd]
        for g in range(GROUP):
            h = kvh * GROUP + g
            part = jnp.dot(og[g * S:(g + 1) * S].astype(jnp.bfloat16),
                           wdense_ref[h],                                  # [hd, H_PAD]
                           preferred_element_type=jnp.float32)             # [S, H_PAD]
            acc = part if acc is None else acc + part
    out = acc + bias_ref[...]
    o_ref[...] = out.astype(o_ref.dtype)       # lane-dense [S, 128] full-tile store


# ----------------------- one-time (init) preprocessing ------------------------
def _rotate_half_cols(w, n_heads):
    """Permute (and sign) output columns so x @ w_rot == rotate_half(x @ w)."""
    h_in = w.shape[0]
    w3 = w.reshape(h_in, n_heads, HEAD_DIM)
    w1, w2 = w3[..., :HEAD_DIM // 2], w3[..., HEAD_DIM // 2:]
    return jnp.concatenate([-w2, w1], axis=-1).reshape(h_in, n_heads * HEAD_DIM)


def precompute_telechat2_params(w_qkv, w_dense, b_dense, max_positions=MAX_POSITIONS):
    """Build weight / table constants once at model-init time (not per call)."""
    H = w_qkv.shape[0]

    # Augmented QKV weight: [q | k | v | rot(q) | rot(k) | 0-pad] -> 256 cols, bf16.
    w_q = w_qkv[:, :Q_SIZE]
    w_k = w_qkv[:, Q_SIZE:Q_SIZE + KV_SIZE]
    pad = AUG_OUT - (QKV_OUT + Q_SIZE + KV_SIZE)
    w_qkv_aug = jnp.concatenate(
        [w_qkv, _rotate_half_cols(w_q, NUM_HEADS),
         _rotate_half_cols(w_k, NUM_KV_HEADS),
         jnp.zeros((H, pad), w_qkv.dtype)], axis=1).astype(jnp.bfloat16)   # [H, 256]

    # Dense weight split per head and padded to 128 lanes, bf16; bias padded, f32.
    wd = w_dense.reshape(NUM_HEADS, HEAD_DIM, H)
    w_dense_h = jnp.pad(wd, ((0, 0), (0, 0), (0, H_PAD - H))).astype(jnp.bfloat16)
    bias = jnp.pad(b_dense, (0, H_PAD - H)).reshape(1, H_PAD).astype(jnp.float32)

    # RoPE cos/sin table caches over max positions, [MAX_POS, 128] f32, with the
    # softmax scaling folded into the q columns, ones/zeros in the v columns.
    inv_freq = 1.0 / (ROPE_THETA ** (
        jnp.arange(0, HEAD_DIM, 2, dtype=jnp.float32) / HEAD_DIM))
    pos = jnp.arange(max_positions, dtype=jnp.float32)
    freqs = pos[:, None] * inv_freq[None, :]                               # [P, hd/2]
    cos = jnp.concatenate([jnp.cos(freqs), jnp.cos(freqs)], axis=-1)       # [P, hd]
    sin = jnp.concatenate([jnp.sin(freqs), jnp.sin(freqs)], axis=-1)
    vpad = LANE - Q_SIZE - KV_SIZE
    t_cos_cache = jnp.concatenate(
        [jnp.tile(cos, (1, NUM_HEADS)) * SCALING,
         jnp.tile(cos, (1, NUM_KV_HEADS)),
         jnp.ones((max_positions, vpad), jnp.float32)], axis=1)            # [P, 128]
    t_sin_cache = jnp.concatenate(
        [jnp.tile(sin, (1, NUM_HEADS)) * SCALING,
         jnp.tile(sin, (1, NUM_KV_HEADS)),
         jnp.zeros((max_positions, vpad), jnp.float32)], axis=1)           # [P, 128]

    return dict(w_qkv_aug=w_qkv_aug, w_dense_h=w_dense_h, bias=bias,
                t_cos_cache=t_cos_cache, t_sin_cache=t_sin_cache)


# --------------------------------- wrapper ------------------------------------
@jax.jit
def telechat2_attention(positions, hidden_states, params):
    S, H = hidden_states.shape

    # Per-call work is only the RoPE-table row gather (tables precomputed).
    t_cos = jnp.take(params["t_cos_cache"], positions, axis=0)            # [S, 128]
    t_sin = jnp.take(params["t_sin_cache"], positions, axis=0)            # [S, 128]

    out = pl.pallas_call(
        _telechat2_attn_kernel,
        out_shape=jax.ShapeDtypeStruct((S, H_PAD), hidden_states.dtype),
        grid=(1,),
        in_specs=[
            pl.BlockSpec((S, H), lambda i: (0, 0)),                        # hidden_states
            pl.BlockSpec((H, AUG_OUT), lambda i: (0, 0)),                  # w_qkv_aug (bf16)
            pl.BlockSpec((S, LANE), lambda i: (0, 0)),                     # t_cos
            pl.BlockSpec((S, LANE), lambda i: (0, 0)),                     # t_sin
            pl.BlockSpec((NUM_HEADS, HEAD_DIM, H_PAD), lambda i: (0, 0, 0)),  # w_dense_h (bf16)
            pl.BlockSpec((1, H_PAD), lambda i: (0, 0)),                    # bias (padded)
        ],
        out_specs=pl.BlockSpec((S, H_PAD), lambda i: (0, 0)),
        compiler_params=pltpu.CompilerParams(
            dimension_semantics=("parallel",)),
    )(hidden_states, params["w_qkv_aug"], t_cos, t_sin,
      params["w_dense_h"], params["bias"])

    return out[:, :H]


# --------------------------- pure-JAX reference -------------------------------
def telechat2_attention_ref(positions, hidden_states, w_qkv, w_dense, b_dense):
    hp = jax.lax.Precision.HIGHEST
    S, H = hidden_states.shape
    hd = HEAD_DIM
    qkv = jnp.dot(hidden_states, w_qkv, precision=hp)
    q, k, v = jnp.split(qkv, [Q_SIZE, Q_SIZE + KV_SIZE], axis=-1)

    inv_freq = 1.0 / (ROPE_THETA ** (jnp.arange(0, hd, 2, dtype=jnp.float32) / hd))
    freqs = positions.astype(jnp.float32)[:, None] * inv_freq[None, :]
    cos = jnp.concatenate([jnp.cos(freqs), jnp.cos(freqs)], axis=-1)
    sin = jnp.concatenate([jnp.sin(freqs), jnp.sin(freqs)], axis=-1)

    def rope(t):  # t: [S, n_heads, hd]
        t1, t2 = t[..., :hd // 2], t[..., hd // 2:]
        rot = jnp.concatenate([-t2, t1], axis=-1)
        return t * cos[:, None, :] + rot * sin[:, None, :]

    q = rope(q.reshape(S, NUM_HEADS, hd))
    k = rope(k.reshape(S, NUM_KV_HEADS, hd))
    v = v.reshape(S, NUM_KV_HEADS, hd)
    k = jnp.repeat(k, GROUP, axis=1)
    v = jnp.repeat(v, GROUP, axis=1)

    scores = jnp.einsum("qhd,khd->hqk", q, k, precision=hp) * SCALING
    mask = jnp.tril(jnp.ones((S, S), dtype=bool))
    scores = jnp.where(mask[None], scores, -1e30)
    p = jax.nn.softmax(scores, axis=-1)
    o = jnp.einsum("hqk,khd->qhd", p, v, precision=hp).reshape(S, Q_SIZE)
    return jnp.dot(o, w_dense, precision=hp) + b_dense[None, :]


# ------------------------------------ main ------------------------------------
if __name__ == "__main__":
    key = jax.random.PRNGKey(0)
    k1, k2, k3, k4 = jax.random.split(key, 4)

    hidden_states = jax.random.normal(k1, (SEQ_LEN, HIDDEN_SIZE), jnp.float32)
    positions = jnp.arange(SEQ_LEN, dtype=jnp.int32)

    # Deterministic synthetic parameters (QKVParallelLinear: no bias,
    # RowParallelLinear "dense": with bias).
    w_qkv = 0.1 * jax.random.normal(k2, (HIDDEN_SIZE, QKV_OUT), jnp.float32)
    w_dense = 0.1 * jax.random.normal(k3, (Q_SIZE, HIDDEN_SIZE), jnp.float32)
    b_dense = 0.1 * jax.random.normal(k4, (HIDDEN_SIZE,), jnp.float32)

    # One-time init-time preprocessing (outside the per-call hot path).
    params = precompute_telechat2_params(w_qkv, w_dense, b_dense)
    params = jax.tree_util.tree_map(jax.block_until_ready, params)

    out = telechat2_attention(positions, hidden_states, params)
    out = jax.block_until_ready(out)

    ref = telechat2_attention_ref(positions, hidden_states, w_qkv, w_dense, b_dense)
    assert out.shape == (SEQ_LEN, HIDDEN_SIZE)
    assert jnp.allclose(out, ref, rtol=3e-2, atol=3e-2), (
        f"max abs diff {jnp.max(jnp.abs(out - ref))}")

    print("KERNEL_OK")
</pallas_src>

<mosaic_0001>
module attributes {stable_mosaic.version = 11 : i64} {
  func.func @_telechat2_attn_kernel(%arg0: i32, %arg1: memref<8x64xf32, #tpu.memory_space<vmem>>, %arg2: memref<64x256xbf16, #tpu.memory_space<vmem>>, %arg3: memref<8x128xf32, #tpu.memory_space<vmem>>, %arg4: memref<8x128xf32, #tpu.memory_space<vmem>>, %arg5: memref<4x16x128xbf16, #tpu.memory_space<vmem>>, %arg6: memref<1x128xf32, #tpu.memory_space<vmem>>, %arg7: memref<8x128xf32, #tpu.memory_space<vmem>>) attributes {dimension_semantics = [#tpu.dimension_semantics<parallel>], iteration_bounds = array<i64: 1>, scalar_prefetch = 0 : i64, scratch_operands = 0 : i64, tpu.core_type = #tpu.core_type<tc>, window_params = [{pipeline_mode = #tpu.pipeline_mode<synchronous>, transform_indices = @transform_0, window_bounds = array<i64: 8, 64>}, {pipeline_mode = #tpu.pipeline_mode<synchronous>, transform_indices = @transform_1, window_bounds = array<i64: 64, 256>}, {pipeline_mode = #tpu.pipeline_mode<synchronous>, transform_indices = @transform_2, window_bounds = array<i64: 8, 128>}, {pipeline_mode = #tpu.pipeline_mode<synchronous>, transform_indices = @transform_3, window_bounds = array<i64: 8, 128>}, {pipeline_mode = #tpu.pipeline_mode<synchronous>, transform_indices = @transform_4, window_bounds = array<i64: 4, 16, 128>}, {pipeline_mode = #tpu.pipeline_mode<synchronous>, transform_indices = @transform_5, window_bounds = array<i64: 1, 128>}, {pipeline_mode = #tpu.pipeline_mode<synchronous>, transform_indices = @transform_6, window_bounds = array<i64: 8, 128>}]} {
    %c0 = arith.constant 0 : index
    %c0_0 = arith.constant 0 : index
    %0 = vector.load %arg1[%c0, %c0_0] : memref<8x64xf32, #tpu.memory_space<vmem>>, vector<8x64xf32>
    %1 = arith.truncf %0 : vector<8x64xf32> to vector<8x64xbf16>
    %c0_1 = arith.constant 0 : index
    %c0_2 = arith.constant 0 : index
    %2 = vector.load %arg2[%c0_1, %c0_2] : memref<64x256xbf16, #tpu.memory_space<vmem>>, vector<64x256xbf16>
    %cst = arith.constant dense<0.000000e+00> : vector<8x256xf32>
    %3 = tpu.matmul %1, %2, %cst {dimension_numbers = #tpu.dot_dimension_numbers<[1], [0], [0], [1], [0, 0, 1, 1], [], []>} : vector<8x64xbf16>, vector<64x256xbf16>, vector<8x256xf32> -> vector<8x256xf32>
    %4 = vector.extract_strided_slice %3 {offsets = [0, 0], sizes = [8, 128], strides = [1, 1]} : vector<8x256xf32> to vector<8x128xf32>
    %5 = vector.extract_strided_slice %3 {offsets = [0, 128], sizes = [8, 128], strides = [1, 1]} : vector<8x256xf32> to vector<8x128xf32>
    %c0_3 = arith.constant 0 : index
    %c0_4 = arith.constant 0 : index
    %6 = vector.load %arg3[%c0_3, %c0_4] : memref<8x128xf32, #tpu.memory_space<vmem>>, vector<8x128xf32>
    %7 = arith.mulf %4, %6 : vector<8x128xf32>
    %c0_5 = arith.constant 0 : index
    %c0_6 = arith.constant 0 : index
    %8 = vector.load %arg4[%c0_5, %c0_6] : memref<8x128xf32, #tpu.memory_space<vmem>>, vector<8x128xf32>
    %9 = arith.mulf %5, %8 : vector<8x128xf32>
    %10 = arith.addf %7, %9 : vector<8x128xf32>
    %11 = vector.extract_strided_slice %10 {offsets = [0, 0], sizes = [8, 64], strides = [1, 1]} : vector<8x128xf32> to vector<8x64xf32>
    %12 = vector.extract_strided_slice %10 {offsets = [0, 64], sizes = [8, 32], strides = [1, 1]} : vector<8x128xf32> to vector<8x32xf32>
    %13 = vector.extract_strided_slice %10 {offsets = [0, 96], sizes = [8, 32], strides = [1, 1]} : vector<8x128xf32> to vector<8x32xf32>
    %14 = vector.extract_strided_slice %12 {offsets = [0, 0], sizes = [8, 16], strides = [1, 1]} : vector<8x32xf32> to vector<8x16xf32>
    %15 = arith.truncf %14 : vector<8x16xf32> to vector<8x16xbf16>
    %16 = vector.extract_strided_slice %11 {offsets = [0, 0], sizes = [8, 16], strides = [1, 1]} : vector<8x64xf32> to vector<8x16xf32>
    %17 = vector.extract_strided_slice %11 {offsets = [0, 16], sizes = [8, 16], strides = [1, 1]} : vector<8x64xf32> to vector<8x16xf32>
    %18 = tpu.concatenate %16, %17 in 0 : vector<8x16xf32>, vector<8x16xf32> -> vector<16x16xf32>
    %19 = arith.truncf %18 : vector<16x16xf32> to vector<16x16xbf16>
    %cst_7 = arith.constant dense<0.000000e+00> : vector<16x8xf32>
    %20 = tpu.matmul %19, %15, %cst_7 {dimension_numbers = #tpu.dot_dimension_numbers<[1], [1], [0], [0], [0, 0, 1, 0], [], []>} : vector<16x16xbf16>, vector<8x16xbf16>, vector<16x8xf32> -> vector<16x8xf32>
    %21 = vector.extract_strided_slice %12 {offsets = [0, 16], sizes = [8, 16], strides = [1, 1]} : vector<8x32xf32> to vector<8x16xf32>
    %22 = arith.truncf %21 : vector<8x16xf32> to vector<8x16xbf16>
    %23 = vector.extract_strided_slice %11 {offsets = [0, 32], sizes = [8, 16], strides = [1, 1]} : vector<8x64xf32> to vector<8x16xf32>
    %24 = vector.extract_strided_slice %11 {offsets = [0, 48], sizes = [8, 16], strides = [1, 1]} : vector<8x64xf32> to vector<8x16xf32>
    %25 = tpu.concatenate %23, %24 in 0 : vector<8x16xf32>, vector<8x16xf32> -> vector<16x16xf32>
    %26 = arith.truncf %25 : vector<16x16xf32> to vector<16x16xbf16>
    %cst_8 = arith.constant dense<0.000000e+00> : vector<16x8xf32>
    %27 = tpu.matmul %26, %22, %cst_8 {dimension_numbers = #tpu.dot_dimension_numbers<[1], [1], [0], [0], [0, 0, 1, 0], [], []>} : vector<16x16xbf16>, vector<8x16xbf16>, vector<16x8xf32> -> vector<16x8xf32>
    %28 = tpu.concatenate %20, %27 in 0 : vector<16x8xf32>, vector<16x8xf32> -> vector<32x8xf32>
    %29 = tpu.iota {dimensions = array<i32: 0>} : vector<32x8xi32>
    %c8_i32 = arith.constant 8 : i32
    %c0_i32 = arith.constant 0 : i32
    %30 = arith.cmpi eq, %c8_i32, %c0_i32 : i32
    %c1_i32 = arith.constant 1 : i32
    %31 = arith.select %30, %c1_i32, %c8_i32 : i32
    %32 = vector.broadcast %31 : i32 to vector<32x8xi32>
    %33 = arith.remsi %29, %32 : vector<32x8xi32>
    %c0_i32_9 = arith.constant 0 : i32
    %34 = vector.broadcast %c0_i32_9 : i32 to vector<32x8xi32>
    %35 = arith.cmpi ne, %33, %34 : vector<32x8xi32>
    %c0_i32_10 = arith.constant 0 : i32
    %36 = vector.broadcast %c0_i32_10 : i32 to vector<32x8xi32>
    %37 = arith.cmpi slt, %33, %36 : vector<32x8xi32>
    %c0_i32_11 = arith.constant 0 : i32
    %38 = arith.cmpi slt, %31, %c0_i32_11 : i32
    %39 = vector.broadcast %38 : i1 to vector<32x8xi1>
    %40 = vector.broadcast %39 : vector<32x8xi1> to vector<32x8xi1>
    %41 = arith.xori %37, %40 : vector<32x8xi1>
    %42 = arith.andi %41, %35 : vector<32x8xi1>
    %43 = vector.broadcast %31 : i32 to vector<32x8xi32>
    %44 = arith.addi %33, %43 : vector<32x8xi32>
    %45 = arith.select %42, %44, %33 : vector<32x8xi1>, vector<32x8xi32>
    %46 = tpu.iota {dimensions = array<i32: 1>} : vector<32x8xi32>
    %47 = arith.cmpi sle, %46, %45 : vector<32x8xi32>
    %cst_12 = arith.constant -1.000000e+30 : f32
    %48 = vector.broadcast %cst_12 : f32 to vector<32x8xf32>
    %49 = arith.select %47, %28, %48 : vector<32x8xi1>, vector<32x8xf32>
    %cst_13 = arith.constant dense<0xFF800000> : vector<32xf32>
    %50 = vector.multi_reduction <maximumf>, %49, %cst_13 [1] : vector<32x8xf32> to vector<32xf32>
    %51 = vector.shape_cast %50 : vector<32xf32> to vector<32x1xf32>
    %52 = vector.broadcast %51 : vector<32x1xf32> to vector<32x8xf32>
    %53 = arith.subf %49, %52 : vector<32x8xf32>
    %54 = math.exp %53 : vector<32x8xf32>
    %cst_14 = arith.constant dense<0.000000e+00> : vector<32xf32>
    %55 = vector.multi_reduction <add>, %54, %cst_14 [1] : vector<32x8xf32> to vector<32xf32>
    %56 = vector.shape_cast %55 : vector<32xf32> to vector<32x1xf32>
    %57 = tpu.reciprocal %56 {approx = true} : vector<32x1xf32> -> vector<32x1xf32>
    %58 = vector.broadcast %57 : vector<32x1xf32> to vector<32x8xf32>
    %59 = arith.mulf %54, %58 : vector<32x8xf32>
    %60 = vector.extract_strided_slice %13 {offsets = [0, 0], sizes = [8, 16], strides = [1, 1]} : vector<8x32xf32> to vector<8x16xf32>
    %61 = arith.truncf %60 : vector<8x16xf32> to vector<8x16xbf16>
    %62 = vector.extract_strided_slice %59 {offsets = [0, 0], sizes = [16, 8], strides = [1, 1]} : vector<32x8xf32> to vector<16x8xf32>
    %63 = arith.truncf %62 : vector<16x8xf32> to vector<16x8xbf16>
    %cst_15 = arith.constant dense<0.000000e+00> : vector<16x16xf32>
    %64 = tpu.matmul %63, %61, %cst_15 {dimension_numbers = #tpu.dot_dimension_numbers<[1], [0], [0], [1], [0, 0, 1, 1], [], []>} : vector<16x8xbf16>, vector<8x16xbf16>, vector<16x16xf32> -> vector<16x16xf32>
    %65 = vector.extract_strided_slice %64 {offsets = [0, 0], sizes = [8, 16], strides = [1, 1]} : vector<16x16xf32> to vector<8x16xf32>
    %66 = arith.truncf %65 : vector<8x16xf32> to vector<8x16xbf16>
    %c0_16 = arith.constant 0 : index
    %c0_17 = arith.constant 0 : index
    %c0_18 = arith.constant 0 : index
    %67 = vector.load %arg5[%c0_16, %c0_17, %c0_18] : memref<4x16x128xbf16, #tpu.memory_space<vmem>>, vector<1x16x128xbf16>
    %68 = vector.shape_cast %67 : vector<1x16x128xbf16> to vector<16x128xbf16>
    %cst_19 = arith.constant dense<0.000000e+00> : vector<8x128xf32>
    %69 = tpu.matmul %66, %68, %cst_19 {dimension_numbers = #tpu.dot_dimension_numbers<[1], [0], [0], [1], [0, 0, 1, 1], [], []>} : vector<8x16xbf16>, vector<16x128xbf16>, vector<8x128xf32> -> vector<8x128xf32>
    %70 = vector.extract_strided_slice %64 {offsets = [8, 0], sizes = [8, 16], strides = [1, 1]} : vector<16x16xf32> to vector<8x16xf32>
    %71 = arith.truncf %70 : vector<8x16xf32> to vector<8x16xbf16>
    %c1 = arith.constant 1 : index
    %c0_20 = arith.constant 0 : index
    %c0_21 = arith.constant 0 : index
    %72 = vector.load %arg5[%c1, %c0_20, %c0_21] : memref<4x16x128xbf16, #tpu.memory_space<vmem>>, vector<1x16x128xbf16>
    %73 = vector.shape_cast %72 : vector<1x16x128xbf16> to vector<16x128xbf16>
    %cst_22 = arith.constant dense<0.000000e+00> : vector<8x128xf32>
    %74 = tpu.matmul %71, %73, %cst_22 {dimension_numbers = #tpu.dot_dimension_numbers<[1], [0], [0], [1], [0, 0, 1, 1], [], []>} : vector<8x16xbf16>, vector<16x128xbf16>, vector<8x128xf32> -> vector<8x128xf32>
    %75 = arith.addf %69, %74 : vector<8x128xf32>
    %76 = vector.extract_strided_slice %13 {offsets = [0, 16], sizes = [8, 16], strides = [1, 1]} : vector<8x32xf32> to vector<8x16xf32>
    %77 = arith.truncf %76 : vector<8x16xf32> to vector<8x16xbf16>
    %78 = vector.extract_strided_slice %59 {offsets = [16, 0], sizes = [16, 8], strides = [1, 1]} : vector<32x8xf32> to vector<16x8xf32>
    %79 = arith.truncf %78 : vector<16x8xf32> to vector<16x8xbf16>
    %cst_23 = arith.constant dense<0.000000e+00> : vector<16x16xf32>
    %80 = tpu.matmul %79, %77, %cst_23 {dimension_numbers = #tpu.dot_dimension_numbers<[1], [0], [0], [1], [0, 0, 1, 1], [], []>} : vector<16x8xbf16>, vector<8x16xbf16>, vector<16x16xf32> -> vector<16x16xf32>
    %81 = vector.extract_strided_slice %80 {offsets = [0, 0], sizes = [8, 16], strides = [1, 1]} : vector<16x16xf32> to vector<8x16xf32>
    %82 = arith.truncf %81 : vector<8x16xf32> to vector<8x16xbf16>
    %c2 = arith.constant 2 : index
    %c0_24 = arith.constant 0 : index
    %c0_25 = arith.constant 0 : index
    %83 = vector.load %arg5[%c2, %c0_24, %c0_25] : memref<4x16x128xbf16, #tpu.memory_space<vmem>>, vector<1x16x128xbf16>
    %84 = vector.shape_cast %83 : vector<1x16x128xbf16> to vector<16x128xbf16>
    %cst_26 = arith.constant dense<0.000000e+00> : vector<8x128xf32>
    %85 = tpu.matmul %82, %84, %cst_26 {dimension_numbers = #tpu.dot_dimension_numbers<[1], [0], [0], [1], [0, 0, 1, 1], [], []>} : vector<8x16xbf16>, vector<16x128xbf16>, vector<8x128xf32> -> vector<8x128xf32>
    %86 = arith.addf %75, %85 : vector<8x128xf32>
    %87 = vector.extract_strided_slice %80 {offsets = [8, 0], sizes = [8, 16], strides = [1, 1]} : vector<16x16xf32> to vector<8x16xf32>
    %88 = arith.truncf %87 : vector<8x16xf32> to vector<8x16xbf16>
    %c3 = arith.constant 3 : index
    %c0_27 = arith.constant 0 : index
    %c0_28 = arith.constant 0 : index
    %89 = vector.load %arg5[%c3, %c0_27, %c0_28] : memref<4x16x128xbf16, #tpu.memory_space<vmem>>, vector<1x16x128xbf16>
    %90 = vector.shape_cast %89 : vector<1x16x128xbf16> to vector<16x128xbf16>
    %cst_29 = arith.constant dense<0.000000e+00> : vector<8x128xf32>
    %91 = tpu.matmul %88, %90, %cst_29 {dimension_numbers = #tpu.dot_dimension_numbers<[1], [0], [0], [1], [0, 0, 1, 1], [], []>} : vector<8x16xbf16>, vector<16x128xbf16>, vector<8x128xf32> -> vector<8x128xf32>
    %92 = arith.addf %86, %91 : vector<8x128xf32>
    %c0_30 = arith.constant 0 : index
    %c0_31 = arith.constant 0 : index
    %93 = vector.load %arg6[%c0_30, %c0_31] : memref<1x128xf32, #tpu.memory_space<vmem>>, vector<1x128xf32>
    %94 = vector.broadcast %93 : vector<1x128xf32> to vector<8x128xf32>
    %95 = arith.addf %92, %94 : vector<8x128xf32>
    %c0_32 = arith.constant 0 : index
    %c0_33 = arith.constant 0 : index
    %96 = vector.load %arg7[%c0_32, %c0_33] : memref<8x128xf32, #tpu.memory_space<vmem>>, vector<8x128xf32>
    tpu.vector_store %arg7[%c0_32, %c0_33], %95 {strides = array<i32>} : memref<8x128xf32, #tpu.memory_space<vmem>>, vector<8x128xf32>,
    return
  }
  func.func @transform_0(%arg0: i32) -> (i32, i32) {
    %c0_i32 = arith.constant 0 : i32
    %c0_i32_0 = arith.constant 0 : i32
    %c0_i32_1 = arith.constant 0 : i32
    return %c0_i32, %c0_i32_0 : i32, i32
  }
  func.func @transform_1(%arg0: i32) -> (i32, i32) {
    %c0_i32 = arith.constant 0 : i32
    %c0_i32_0 = arith.constant 0 : i32
    %c0_i32_1 = arith.constant 0 : i32
    return %c0_i32, %c0_i32_0 : i32, i32
  }
  func.func @transform_2(%arg0: i32) -> (i32, i32) {
    %c0_i32 = arith.constant 0 : i32
    %c0_i32_0 = arith.constant 0 : i32
    %c0_i32_1 = arith.constant 0 : i32
    return %c0_i32, %c0_i32_0 : i32, i32
  }
  func.func @transform_3(%arg0: i32) -> (i32, i32) {
    %c0_i32 = arith.constant 0 : i32
    %c0_i32_0 = arith.constant 0 : i32
    %c0_i32_1 = arith.constant 0 : i32
    return %c0_i32, %c0_i32_0 : i32, i32
  }
  func.func @transform_4(%arg0: i32) -> (i32, i32, i32) {
    %c0_i32 = arith.constant 0 : i32
    %c0_i32_0 = arith.constant 0 : i32
    %c0_i32_1 = arith.constant 0 : i32
    %c0_i32_2 = arith.constant 0 : i32
    return %c0_i32, %c0_i32_0, %c0_i32_1 : i32, i32, i32
  }
  func.func @transform_5(%arg0: i32) -> (i32, i32) {
    %c0_i32 = arith.constant 0 : i32
    %c0_i32_0 = arith.constant 0 : i32
    %c0_i32_1 = arith.constant 0 : i32
    return %c0_i32, %c0_i32_0 : i32, i32
  }
  func.func @transform_6(%arg0: i32) -> (i32, i32) {
    %c0_i32 = arith.constant 0 : i32
    %c0_i32_0 = arith.constant 0 : i32
    %c0_i32_1 = arith.constant 0 : i32
    return %c0_i32, %c0_i32_0 : i32, i32
  }
}

</mosaic_0001>

<bundles_post_ra>
// kernel: telechat2_attention.1
= control target key start
LH: loop header
LB: loop body
LE: loop exit
PB: predicated region body
PF: predicated region fallthrough
CT: control target
= control target key end

     0   :  { %11 = vsyncpa [#allocation3], 0  ;;  %s1151_s0 = inlined_call_operand.hbm [shape: f32[8,64], index: 0, kind: input, shape index: {}]   ;;  %s1152_s1 = inlined_call_operand.hbm [shape: bf16[64,256], index: 1, kind: input, shape index: {}]   ;;  %s1153_s2 = inlined_call_operand.vmem [shape: f32[8,128], index: 2, kind: input, shape index: {}]   ;;  %s1154_s3 = inlined_call_operand.vmem [shape: f32[8,128], index: 3, kind: input, shape index: {}]   ;;  %s1155_s4 = inlined_call_operand.hbm [shape: bf16[4,16,128], index: 4, kind: input, shape index: {}]   ;;  %s1156_s5 = inlined_call_operand.hbm [shape: f32[1,128], index: 5, kind: input, shape index: {}]   ;;  %s1157_s6 = inlined_call_operand.hbm [shape: f32[8,128], index: 6, kind: output, shape index: {}]  }
   0x1   :  { %12 = vsyncpa [#allocation6], 0 }
   0x2   :  { %13 = vsyncpa [#allocation9], 0 }
   0x3   :  { %14 = vsyncpa [#allocation4], 0  ;;  %s986_s21 = smov [#allocation5]   ;;  %s868_s25 = scalar_lea.hbm %s1152_s1, 1024 }
   0x4   :  { %s30_s22 = sshll.u32 %s986_s21, 4  ;;  %p869_p0 = scmp.ne.s32.totalorder %s1152_s1, %s868_s25  ;;  %s31_s22 = int_to_ptr.vmem [resolvable:$true] %s30_s22 }
   0x5   :  { %p872_p1 = scmp.lt.u32.totalorder %s868_s25, %s1152_s1 }
   0x7   :  { %p874_p2 = pnand %p872_p1, %p869_p0 }
   0x9   :  { %877 = shalt.err (!%p874_p2)
}
   0xa   :  { %s878_s30 = scalar_lea.vmem %s31_s22, 1024  ;;  %p883_p4 = scmp.lt.s32.totalorder %s31_s22, %s31_s22 }
   0xb   :  { %p879_p3 = scmp.ne.s32.totalorder %s31_s22, %s878_s30  ;;  %p884_p5 = scmp.lt.s32.totalorder %s878_s30, %s878_s30 }
   0xd   :  { %p885_p6 = por %p884_p5, %p883_p4 }
   0xf   :  { %p886_p7 = pnand %p885_p6, %p879_p3 }
  0x11   :  { %889 = shalt.err (!%p886_p7)
}
  0x12   :  { %s987_s7 = smov 128   ;;  %s988_s8 = smov 8  }
  0x13   :  { %36 = dma.hbm_to_vmem [thread:$0]  %s1152_s1, 1024, %s31_s22, [#allocation6], %s987_s7, %s987_s7, %s988_s8  }
  0x14   :  { %s989_s11 = smov [#allocation2]   ;;  %s990_s13 = smov [#allocation7]  }
  0x15   :  { %s21_s12 = sshll.u32 %s989_s11, 4  ;;  %s46_s14 = sshll.u32 %s990_s13, 4  ;;  %s22_s12 = int_to_ptr.vmem [resolvable:$true] %s21_s12  ;;  %s47_s14 = int_to_ptr.vmem [resolvable:$true] %s46_s14 }
  0x16   :  { %s890_s17 = scalar_lea.hbm %s1151_s0, 128 }
  0x17   :  { %p891_p8 = scmp.ne.s32.totalorder %s1151_s0, %s890_s17  ;;  %p894_p9 = scmp.lt.u32.totalorder %s890_s17, %s1151_s0 }
  0x19   :  { %p896_p10 = pnand %p894_p9, %p891_p8 }
  0x1b   :  { %899 = shalt.err (!%p896_p10)
}
  0x1c   :  { %s900_s1 = scalar_lea.vmem %s22_s12, 128  ;;  %p905_p12 = scmp.lt.s32.totalorder %s22_s12, %s22_s12 }
  0x1d   :  { %p901_p11 = scmp.ne.s32.totalorder %s22_s12, %s900_s1  ;;  %p906_p13 = scmp.lt.s32.totalorder %s900_s1, %s900_s1 }
  0x1f   :  { %p907_p0 = por %p906_p13, %p905_p12 }
  0x21   :  { %p908_p1 = pnand %p907_p0, %p901_p11 }
  0x23   :  { %911 = shalt.err (!%p908_p1)
}
  0x24   :  { %24 = dma.hbm_to_vmem [thread:$0]  %s1151_s0, 128, %s22_s12, [#allocation3]  }
  0x25   :  { %s912_s26 = scalar_lea.hbm %s1155_s4, 512 }
  0x26   :  { %p913_p2 = scmp.ne.s32.totalorder %s1155_s4, %s912_s26  ;;  %p916_p3 = scmp.lt.u32.totalorder %s912_s26, %s1155_s4 }
  0x28   :  { %p918_p4 = pnand %p916_p3, %p913_p2 }
  0x2a   :  { %921 = shalt.err (!%p918_p4)
}
  0x2b   :  { %s922_s7 = scalar_lea.vmem %s47_s14, 512  ;;  %p927_p6 = scmp.lt.s32.totalorder %s47_s14, %s47_s14 }
  0x2c   :  { %p923_p5 = scmp.ne.s32.totalorder %s47_s14, %s922_s7  ;;  %p928_p7 = scmp.lt.s32.totalorder %s922_s7, %s922_s7 }
  0x2e   :  { %p929_p8 = por %p928_p7, %p927_p6 }
  0x30   :  { %p930_p9 = pnand %p929_p8, %p923_p5 }
  0x32   :  { %933 = shalt.err (!%p930_p9)
}
  0x33   :  { %s991_s0 = smov 64   ;;  %s992_s8 = smov 4  }
  0x34   :  { %52 = dma.hbm_to_vmem [thread:$0]  %s1155_s4, 512, %s47_s14, [#allocation6], %s991_s0, %s991_s0, %s992_s8  }
  0x35   :  { %s993_s11 = smov [#allocation8]   ;;  %s934_s16 = scalar_lea.hbm %s1156_s5, 16 }
  0x36   :  { %s59_s12 = sshll.u32 %s993_s11, 4  ;;  %p935_p10 = scmp.ne.s32.totalorder %s1156_s5, %s934_s16  ;;  %s60_s12 = int_to_ptr.vmem [resolvable:$true] %s59_s12 }
  0x37   :  { %p938_p11 = scmp.lt.u32.totalorder %s934_s16, %s1156_s5 }
  0x39   :  { %p940_p12 = pnand %p938_p11, %p935_p10 }
  0x3b   :  { %943 = shalt.err (!%p940_p12)
}
  0x3c   :  { %s944_s21 = scalar_lea.vmem %s60_s12, 16  ;;  %s948_s4 = scalar_lea.vmem %s60_s12, 32 }
  0x3d   :  { %p945_p13 = scmp.ne.s32.totalorder %s60_s12, %s944_s21  ;;  %p949_p0 = scmp.lt.s32.totalorder %s60_s12, %s60_s12 }
  0x3e   :  { %p950_p1 = scmp.lt.s32.totalorder %s948_s4, %s944_s21 }
  0x40   :  { %p951_p2 = por %p950_p1, %p949_p0 }
  0x42   :  { %p952_p3 = pnand %p951_p2, %p945_p13 }
  0x44   :  { %955 = shalt.err (!%p952_p3)
}
  0x45   :  { %62 = dma.hbm_to_vmem [thread:$0]  %s1156_s5, 16, %s60_s12, [#allocation9]  }
  0x46   :  { %978 = dma.done.wait [#allocation3], 128  }
  0x47   :  { %979 = vsyncadd [#allocation3], 4294967168 }
  0x48   :  { %980 = dma.done.wait [#allocation6], 1536  }
  0x49   :  { %981 = vsyncadd [#allocation6], 4294965760 }
  0x4a   :  { %982 = dma.done.wait [#allocation9], 16  }
  0x4b   :  { %983 = vsyncadd [#allocation9], 4294967280  ;;  %v994_v0 = vmov 0   ;;  %v836_v1 = vld [vmem:[#allocation5 + $0x4] ss:$8 sps:$4 sm:$0xff]   ;;  %v76_v9 = vld [vmem:[#allocation2] sm:$0xff]  ;;  %v285_v29 = vlaneseq }
  0x4c   :  { %162 = vmatprep.mubr.bf16.mxu0 %v994_v0  ;;  %v838_v2 = vld [vmem:[#allocation5] ss:$8 sps:$4 sm:$0xff]   ;;  %130 = vmatprep.subr.bf16.mxu0 %v836_v1  ;;  %v839_v3 = vld [vmem:[#allocation5 + $0x14] ss:$8 sps:$4 sm:$0xff]   ;;  %v841_v4 = vld [vmem:[#allocation5 + $0x10] ss:$8 sps:$4 sm:$0xff]   ;;  %v77_v10 = vpack.c.bf16 %v76_v9, %v76_v9 }
  0x4d   :  { %131 = vmatpush1.bf16.msra.mxu0 %v838_v2  ;;  %v842_v5 = vld [vmem:[#allocation5 + $0x24] ss:$8 sps:$4 sm:$0xff]   ;;  %v844_v6 = vld [vmem:[#allocation5 + $0x20] ss:$8 sps:$4 sm:$0xff]   ;;  %v845_v7 = vld [vmem:[#allocation5 + $0x34] ss:$8 sps:$4 sm:$0xff]  }
  0x4e   :  { %132 = vmatprep.subr.bf16.mxu0 %v839_v3  ;;  %v847_v8 = vld [vmem:[#allocation5 + $0x30] ss:$8 sps:$4 sm:$0xff]   ;;  %vm126_vm0 = vcmask 523264   ;;  %v995_v11 = vmov 0.0   ;;  %vm996_vm1 = vmmov 0   ;;  %vm185_vm2 = vcmask 130048  }
  0x4f   :  { %771 = vmatprep.subr.bf16.mxu1 %v995_v11  ;;  %v171_v12 = vld [vmem:[%s1153_s2] sm:$0xff]  ;;  %773 = vmatprep.mubr.msk.bf16.mxu1 %vm996_vm1, %v995_v11  ;;  %s997_s2 = smov 48   ;;  %s999_s25 = smov 96   ;;  %v286_v30 = vshrl.u32 %v285_v29, 7  ;;  %v339_v33 = vand.u32 127, %v285_v29  ;;  %vm348_vm4 = vcmask 64512  }
  0x50   :  { %v173_v13 = vld [vmem:[%s1154_s3] sm:$0xff]  ;;  %s998_s3 = smov 112   ;;  %s1000_s26 = smov 32   ;;  %vm399_vm6 = vcmask 1043456  }
  0x51   :  { %133 = vmatpush1.bf16.msra.mxu0 %v841_v4  ;;  %v287_v31 = vadd.s32 8, %v286_v30  ;;  %v294_v32 = vand.u32 7, %v286_v30  ;;  %s1001_s27 = smov 16   ;;  %v288_v55 = vadd.s32 16, %v286_v30  ;;  %v289_v57 = vadd.s32 24, %v286_v30  ;;  %s1002_s28 = smov [#allocation10]  }
  0x52   :  { %134 = vmatprep.subr.bf16.mxu0 %v842_v5  ;;  %s722_s29 = sshll.u32 %s1002_s28, 4  ;;  %s723_s29 = int_to_ptr.vmem [resolvable:$true] %s722_s29 }
  0x53   :  { %v301_v34 = vand.u32 7, %v287_v31  ;;  %vm340_vm3 = vcmp.le.s32.totalorder %v339_v33, %v294_v32  ;;  %v308_v56 = vand.u32 7, %v288_v55  ;;  %v315_v61 = vand.u32 7, %v289_v57  ;;  %s956_s30 = scalar_lea.vmem %s723_s29, 128  ;;  %p961_p5 = scmp.lt.s32.totalorder %s723_s29, %s723_s29 }
  0x54   :  { %p957_p4 = scmp.ne.s32.totalorder %s723_s29, %s956_s30  ;;  %p962_p6 = scmp.lt.s32.totalorder %s956_s30, %s956_s30 }
  0x55   :  { %135 = vmatpush1.bf16.msra.mxu0 %v844_v6  ;;  %vm341_vm5 = vcmp.le.s32.totalorder %v339_v33, %v301_v34  ;;  %vm342_vm7 = vcmp.le.s32.totalorder %v339_v33, %v308_v56  ;;  %vm343_vm8 = vcmp.le.s32.totalorder %v339_v33, %v315_v61 }
  0x56   :  { %136 = vmatprep.subr.bf16.mxu0 %v845_v7  ;;  %p963_p7 = por %p962_p6, %p961_p5 }
  0x58   :  { %p964_p8 = pnand %p963_p7, %p957_p4 }
  0x59   :  { %137 = vmatpush1.bf16.msra.mxu0 %v847_v8 }
  0x5a   :  { %783 = vmatprep.subr.bf16.mxu0 %v995_v11 }
  0x5c   :  { %741 = vmatmul.mubr.msk.bf16.vlgmr.msra.gmra.mrb[0].mxu0 %vm126_vm0, %v77_v10 }
  0x5d   :  { %785 = vmatprep.mubr.msk.bf16.mxu0 %vm996_vm1, %v995_v11 }
 0x12f   :  { %v164_v14 = vpop.f32.mrb[0].mxu0 }
 0x130   :  { %v172_v15 = vmul.f32 %v171_v12, %v164_v14  ;;  %v166_v16 = vpop.f32.mrb[1].mxu0 }
 0x131   :  { %v174_v17 = vmul.f32 %v173_v13, %v166_v16  ;;  %v168_v18 = vpop.f32.mrb[2].mxu0 }
 0x132   :  { %v169_v19 = vpop.f32.mrb[3].mxu0 }
 0x133   :  { %v175_v20 = vadd.f32 %v174_v17, %v172_v15 }
 0x135   :  { %v176_v21 = vpack.c.bf16 %v175_v20, %v175_v20 }
 0x137   :  { %236 = vrot.lane.b32.xlu1 %v176_v21, %s997_s2  ;;  %183 = vrot.lane.b32.xlu0 %v176_v21, %s991_s0 }
 0x13b   :  { %178 = vrot.lane.b32.xlu0 %v175_v20, %s998_s3 }
 0x1a9   :  { %v184_v22 = vpop.permute.xlu0 %183  ;;  %v237_v26 = vpop.permute.xlu1 %236 }
 0x1aa   :  { %v190_v23 = vsel %vm185_vm2, %v184_v22, 0  ;;  %v242_v27 = vsel %vm185_vm2, %v237_v26, 0  ;;  %v849_v22 = vld [vmem:[#allocation7] sm:$0xff]  }
 0x1ab   :  { %772 = vmatpush3.bf16.xpose.msra.mxu1 %v190_v23 }
 0x1ac   :  { %777 = vmatprep.subr.bf16.mxu1 %v995_v11 }
 0x1ad   :  { %v179_v24 = vpop.permute.xlu0 %178 }
 0x1ae   :  { %v181_v25 = vpack.c.bf16 %v179_v24, %v175_v20 }
 0x1b0   :  { %234 = vrot.lane.b32.xlu1 %v181_v25, %s999_s25 }
 0x1b2   :  { %774 = vmatmul.mubr.msk.bf16.vlgmr.msra.gmra.mrb[0].mxu1 %vm185_vm2, %v181_v25 }
 0x1b3   :  { %778 = vmatpush3.bf16.xpose.msra.mxu1 %v242_v27  ;;  %779 = vmatprep.mubr.msk.bf16.mxu1 %vm996_vm1, %v995_v11 }
 0x1b4   :  { %789 = vmatprep.subr.bf16.mxu1 %v995_v11 }
 0x222   :  { %v235_v28 = vpop.permute.xlu1 %234 }
 0x223   :  { %780 = vmatmul.mubr.msk.bf16.vlgmr.msra.gmra.mrb[4].mxu1 %vm185_vm2, %v235_v28 }
 0x224   :  { %791 = vmatprep.mubr.msk.bf16.mxu1 %vm996_vm1, %v995_v11 }
 0x285   :  { %v226_v35 = vpop.f32.mrb[0].mxu1 }
 0x286   :  { %v344_v36 = vsel %vm340_vm3, %v226_v35, -1e+30  ;;  %v775_v37 = vpop.f32.mrb[1].mxu1 }
 0x287   :  { %v229_v38 = vpop.f32.mrb[2].mxu1  ;;  %v349_v39 = vsel %vm348_vm4, %v344_v36, -inf }
 0x288   :  { %v345_v40 = vsel %vm341_vm5, %v229_v38, -1e+30  ;;  %350 = vmax.xlane.f32.xlu0 %v349_v39  ;;  %v776_v41 = vpop.f32.mrb[3].mxu1  ;;  %v850_v38 = vld [vmem:[#allocation7 + $0x10] sm:$0xff]   ;;  %v851_v39 = vld [vmem:[#allocation7 + $0x18] sm:$0xff]  }
 0x289   :  { %v352_v42 = vsel %vm348_vm4, %v345_v40, -inf }
 0x28a   :  { %353 = vmax.xlane.f32.xlu1 %v352_v42 }
 0x29b   :  { %394 = vrot.lane.b32.xlu1 %v176_v21, %s1000_s26 }
 0x29f   :  { %550 = vrot.lane.b32.xlu1 %v176_v21, %s1001_s27  ;;  %v848_v21 = vld [vmem:[#allocation7 + $0x8] sm:$0xff]  }
 0x2a0   :  { %790 = vmatpush3.bf16.msra.mxu1 %v848_v21 }
 0x2a1   :  { %801 = vmatprep.subr.bf16.mxu1 %v995_v11 }
 0x2f6   :  { %v278_v43 = vpop.f32.mrb[4].mxu1 }
 0x2f7   :  { %v781_v44 = vpop.f32.mrb[5].mxu1  ;;  %v346_v63 = vsel %vm342_vm7, %v278_v43, -1e+30 }
 0x2f8   :  { %v281_v45 = vpop.f32.mrb[6].mxu1  ;;  %v355_v0 = vsel %vm348_vm4, %v346_v63, -inf }
 0x2f9   :  { %v782_v46 = vpop.f32.mrb[7].mxu1  ;;  %v347_v1 = vsel %vm343_vm8, %v281_v45, -1e+30 }
 0x2fa   :  { %v358_v2 = vsel %vm348_vm4, %v347_v1, -inf }
 0x315   :  { %v351_v47 = vpop.xlane.xlu0 %350 }
 0x316   :  { %v361_v48 = vsub.f32 %v344_v36, %v351_v47 }
 0x317   :  { %v354_v49 = vpop.xlane.xlu1 %353 }
 0x318   :  { %v365_v50 = vmul.f32 1.442695, %v361_v48  ;;  %v362_v51 = vsub.f32 %v345_v40, %v354_v49 }
 0x31a   :  { %852 = vpow2.f32 %v365_v50  ;;  %v367_v52 = vmul.f32 1.442695, %v362_v51 }
 0x31b   :  { %v395_v53 = vpop.permute.xlu1 %394 }
 0x31c   :  { %854 = vpow2.f32 %v367_v52  ;;  %v401_v54 = vsel %vm399_vm6, %v395_v53, 0 }
 0x31d   :  { %784 = vmatpush3.bf16.msra.mxu0 %v401_v54 }
 0x31e   :  { %795 = vmatprep.subr.bf16.mxu0 %v995_v11 }
 0x31f   :  { %v551_v28 = vpop.permute.xlu1 %550 }
 0x320   :  { %v556_v33 = vsel %vm399_vm6, %v551_v28, 0 }
 0x324   :  { %v853_v58 = vpop.eup %852 }
 0x325   :  { %v373_v59 = vsel %vm348_vm4, %v853_v58, 0.0 }
 0x326   :  { %v855_v60 = vpop.eup %854  ;;  %374 = vadd.xlane.f32.xlu0 %v373_v59  ;;  %v754_v59 = vld [vmem:[#allocation8] ss:$0 sm:$0xff] }
 0x327   :  { %v376_v62 = vsel %vm348_vm4, %v855_v60, 0.0 }
 0x32a   :  { %377 = vadd.xlane.f32.xlu0 %v376_v62 }
 0x32e   :  { %356 = vmax.xlane.f32.xlu0 %v355_v0 }
 0x332   :  { %359 = vmax.xlane.f32.xlu0 %v358_v2 }
 0x3b3   :  { %v375_v3 = vpop.xlane.xlu0 %374 }
 0x3b4   :  { %856 = vrcp.f32 %v375_v3 }
 0x3b7   :  { %v378_v4 = vpop.xlane.xlu0 %377 }
 0x3b8   :  { %858 = vrcp.f32 %v378_v4 }
 0x3bb   :  { %v357_v5 = vpop.xlane.xlu0 %356 }
 0x3bc   :  { %v363_v6 = vsub.f32 %v346_v63, %v357_v5 }
 0x3be   :  { %v369_v7 = vmul.f32 1.442695, %v363_v6  ;;  %v857_v9 = vpop.eup %856 }
 0x3bf   :  { %v360_v8 = vpop.xlane.xlu0 %359  ;;  %v389_v14 = vmul.f32 %v857_v9, %v853_v58 }
 0x3c0   :  { %860 = vpow2.f32 %v369_v7  ;;  %v364_v10 = vsub.f32 %v347_v1, %v360_v8 }
 0x3c2   :  { %v859_v12 = vpop.eup %858  ;;  %v371_v13 = vmul.f32 1.442695, %v364_v10 }
 0x3c3   :  { %v390_v15 = vmul.f32 %v859_v12, %v855_v60 }
 0x3c4   :  { %862 = vpow2.f32 %v371_v13 }
 0x3c5   :  { %v393_v16 = vpack.c.bf16 %v390_v15, %v389_v14 }
 0x3c7   :  { %786 = vmatmul.mubr.msk.bf16.vlgmr.msra.gmra.mrb[4].mxu0 %vm348_vm4, %v393_v16 }
 0x3c8   :  { %797 = vmatprep.mubr.msk.bf16.mxu0 %vm996_vm1, %v995_v11  ;;  %796 = vmatpush3.bf16.msra.mxu0 %v849_v22 }
 0x3c9   :  { %807 = vmatprep.subr.bf16.mxu0 %v995_v11 }
 0x3ca   :  { %v861_v17 = vpop.eup %860 }
 0x3cb   :  { %v379_v18 = vsel %vm348_vm4, %v861_v17, 0.0 }
 0x3cc   :  { %380 = vadd.xlane.f32.xlu0 %v379_v18 }
 0x3ce   :  { %v863_v19 = vpop.eup %862 }
 0x3cf   :  { %v382_v20 = vsel %vm348_vm4, %v863_v19, 0.0 }
 0x3d0   :  { %383 = vadd.xlane.f32.xlu0 %v382_v20 }
 0x459   :  { %v381_v23 = vpop.xlane.xlu0 %380 }
 0x45d   :  { %v384_v24 = vpop.xlane.xlu0 %383 }
 0x45e   :  { %864 = vrcp.f32 %v384_v24 }
 0x45f   :  { %866 = vrcp.f32 %v381_v23 }
 0x468   :  { %v865_v32 = vpop.eup %864 }
 0x469   :  { %v867_v34 = vpop.eup %866  ;;  %v392_v35 = vmul.f32 %v865_v32, %v863_v19 }
 0x46a   :  { %v391_v36 = vmul.f32 %v867_v34, %v861_v17 }
 0x46c   :  { %v549_v37 = vpack.c.bf16 %v392_v35, %v391_v36 }
 0x49a   :  { %v437_v25 = vpop.f32.mrb[4].mxu0 }
 0x49b   :  { %v444_v26 = vpack.c.bf16 %v437_v25, %v437_v25  ;;  %v787_v27 = vpop.f32.mrb[5].mxu0 }
 0x49c   :  { %v440_v29 = vpop.f32.mrb[6].mxu0 }
 0x49d   :  { %v447_v30 = vpack.c.bf16 %v440_v29, %v440_v29  ;;  %v788_v31 = vpop.f32.mrb[7].mxu0  ;;  %798 = vmatmul.mubr.msk.bf16.vlgmr.msra.gmra.mrb[8].mxu0 %vm185_vm2, %v444_v26 }
 0x49e   :  { %809 = vmatprep.mubr.msk.bf16.mxu0 %vm996_vm1, %v995_v11  ;;  %808 = vmatpush3.bf16.msra.mxu0 %v850_v38 }
 0x49f   :  { %792 = vmatmul.mubr.msk.bf16.vlgmr.msra.gmra.mrb[8].mxu1 %vm185_vm2, %v447_v30 }
 0x4a0   :  { %802 = vmatpush3.bf16.msra.mxu1 %v556_v33  ;;  %803 = vmatprep.mubr.msk.bf16.mxu1 %vm996_vm1, %v995_v11 }
 0x4a1   :  { %813 = vmatprep.subr.bf16.mxu1 %v995_v11 }
 0x4a7   :  { %804 = vmatmul.mubr.msk.bf16.vlgmr.msra.gmra.mrb[12].mxu1 %vm348_vm4, %v549_v37 }
 0x4a8   :  { %815 = vmatprep.mubr.msk.bf16.mxu1 %vm996_vm1, %v995_v11  ;;  %814 = vmatpush3.bf16.msra.mxu1 %v851_v39 }
 0x570   :  { %v543_v40 = vpop.f32.mrb[8].mxu0 }
 0x571   :  { %v799_v41 = vpop.f32.mrb[9].mxu0 }
 0x572   :  { %v494_v42 = vpop.f32.mrb[8].mxu1  ;;  %v546_v43 = vpop.f32.mrb[10].mxu0 }
 0x573   :  { %v544_v44 = vadd.f32 %v543_v40, %v494_v42  ;;  %v793_v45 = vpop.f32.mrb[9].mxu1  ;;  %v800_v46 = vpop.f32.mrb[11].mxu0 }
 0x574   :  { %v497_v47 = vpop.f32.mrb[10].mxu1 }
 0x575   :  { %v794_v48 = vpop.f32.mrb[11].mxu1 }
 0x57a   :  { %v592_v49 = vpop.f32.mrb[12].mxu1 }
 0x57b   :  { %v599_v50 = vpack.c.bf16 %v592_v49, %v592_v49  ;;  %v805_v51 = vpop.f32.mrb[13].mxu1 }
 0x57c   :  { %v595_v52 = vpop.f32.mrb[14].mxu1 }
 0x57d   :  { %v653_v53 = vpack.c.bf16 %v595_v52, %v595_v52  ;;  %v806_v54 = vpop.f32.mrb[15].mxu1  ;;  %810 = vmatmul.mubr.msk.bf16.vlgmr.msra.gmra.mrb[12].mxu0 %vm185_vm2, %v599_v50 }
 0x57f   :  { %816 = vmatmul.mubr.msk.bf16.vlgmr.msra.gmra.mrb[16].mxu1 %vm185_vm2, %v653_v53 }
 0x650   :  { %v646_v11 = vpop.f32.mrb[12].mxu0 }
 0x651   :  { %v652_v55 = vadd.f32 %v646_v11, %v544_v44  ;;  %v811_v56 = vpop.f32.mrb[13].mxu0 }
 0x652   :  { %v649_v57 = vpop.f32.mrb[14].mxu0  ;;  %v700_v58 = vpop.f32.mrb[16].mxu1 }
 0x653   :  { %v706_v60 = vadd.f32 %v700_v58, %v652_v55  ;;  %v812_v61 = vpop.f32.mrb[15].mxu0  ;;  %v817_v62 = vpop.f32.mrb[17].mxu1 }
 0x654   :  { %v703_v63 = vpop.f32.mrb[18].mxu1 }
 0x655   :  { %v714_v0 = vadd.f32 %v754_v59, %v706_v60  ;;  %v818_v1 = vpop.f32.mrb[19].mxu1 }
 0x657   :  { %715 = vst [vmem:[#allocation10] sm:$0xff] %v714_v0 }
 0x658   :  { %967 = shalt.err (!%p964_p8)
}
 0x659   :  { %s968_s8 = scalar_lea.hbm %s1157_s6, 128 }
 0x65a   :  { %p969_p9 = scmp.ne.s32.totalorder %s1157_s6, %s968_s8  ;;  %p972_p10 = scmp.lt.u32.totalorder %s968_s8, %s1157_s6 }
 0x65c   :  { %p974_p11 = pnand %p972_p10, %p969_p9 }
 0x65e   :  { %977 = shalt.err (!%p974_p11)
}
 0x65f   :  { %725 = dma.vmem_to_hbm [thread:$0]  %s723_s29, 128, %s1157_s6, [#allocation4]  }
 0x660   :  { %984 = dma.done.wait [#allocation4], 128  }
 0x661   :  { %985 = vsyncadd [#allocation4], 4294967168 }
 0x662   :  { %729 = vsyncpa [#allocation3], 1 }
 0x663   :  { %730 = vsyncpa [#allocation6], 1 }
 0x664   :  { %731 = vsyncpa [#allocation9], 1 }
 0x665   :  { %732 = vsyncpa [#allocation4], 1 }

</bundles_post_ra>
